<compile_context>
chip_gen: v7x
topology: tpu7x:2x2x1
jax: 0.10.0
libtpu: 0.0.40
codegen_flags: <defaults>
</compile_context>

<pallas_src>
import jax
import jax.numpy as jnp
from jax import lax
from jax.experimental import pallas as pl
from jax.experimental.pallas import tpu as pltpu

BN_EPS = 1e-5
C = 3  # fixed by the module: Conv2d(3, 3, 1), BatchNorm2d(3)

_PAIRS = ((0, 0), (0, 1), (0, 2), (1, 1), (1, 2), (2, 2))
_NSTAT = C + len(_PAIRS)          # 3 channel sums + 6 cross-product sums = 9
_LANE = 128
_SUB = 8
_TARGET_BLOCK_BYTES = 4 * 1024 * 1024   # ~4 MiB input block per grid step
_MAX_S = 2048                            # row-tile cap (3 MiB per sample block)


def _round_up(v, m):
    return -(-v // m) * m


def _vreg_sum(a):
    """Reduce an array with trailing lane dim 128 to an (8, 128) partial.

    When the total row count is a multiple of 8 this is a pure sequence of
    full-vreg VALU adds (no XLU work). The ragged fallback (tiny inputs only)
    does one sublane reduce and pads back to (8, 128).
    """
    lane = a.shape[-1]
    rows = a.size // lane
    if rows % _SUB == 0:
        return a.reshape(rows // _SUB, _SUB, lane).sum(axis=0)
    r = a.reshape(rows, lane).sum(axis=0, keepdims=True)          # (1, 128)
    return jnp.concatenate([r, jnp.zeros((_SUB - 1, lane), a.dtype)], axis=0)


def _stats_kernel(x_ref, part_ref):
    """Per-block raw-x moment partials (no in-kernel accumulation needed).

    x_ref    : VMEM (Nb, C, S, 128)
    part_ref : VMEM (9, 8, 128): rows 0..2 = sum x_c,
               rows 3..8 = sum x_i*x_j for pairs (0,0),(0,1),(0,2),(1,1),(1,2),(2,2)
    """
    xs = [x_ref[:, c:c + 1, :, :] for c in range(C)]              # (Nb,1,S,128)
    parts = [_vreg_sum(xs[c]) for c in range(C)]
    parts += [_vreg_sum(xs[i] * xs[j]) for (i, j) in _PAIRS]
    part_ref[...] = jnp.stack(parts, axis=0)                      # (9, 8, 128)


def _apply_kernel(wb_ref, x_ref, o_ref):
    """y = W_eff @ x + b_eff (folded conv1+BN+conv2), dense (S,128) tiles.

    wb_ref : SMEM (C, C+1)  [:, :C] = W_eff, [:, C] = b_eff
    x_ref  : VMEM (Nb, C, S, 128)
    o_ref  : VMEM (Nb, C, S, 128)
    """
    xs = [x_ref[:, c:c + 1, :, :] for c in range(C)]              # (Nb,1,S,128)
    for c in range(C):  # static unroll, C == 3
        y = (wb_ref[c, 0] * xs[0] + wb_ref[c, 1] * xs[1]
             + wb_ref[c, 2] * xs[2] + wb_ref[c, C])
        o_ref[:, c:c + 1, :, :] = y


def _plan_tiles(hw, n):
    """Choose padded spatial size, sublane-dense row tile S, and batch tile Nb."""
    hwp = _round_up(hw, _LANE)
    rows = hwp // _LANE
    if rows % _SUB != 0 and rows > _MAX_S:
        # Large ragged row count: pad slightly more so tiles stay 8-sublane dense.
        hwp = _round_up(hw, _LANE * _SUB)
        rows = hwp // _LANE
    if rows % _SUB == 0:
        s = _SUB
        cap = min(rows, _MAX_S)
        for cand in range(_SUB, cap + 1, _SUB):
            if rows % cand == 0:
                s = cand
    else:
        s = rows  # full-dim block (always legal); only hit for small inputs
    per_sample = C * s * _LANE * 4
    nb = 1
    if per_sample < _TARGET_BLOCK_BYTES and n > 1:
        want = max(1, _TARGET_BLOCK_BYTES // per_sample)
        for d in range(1, n + 1):
            if n % d == 0 and d <= want:
                nb = d
    return hwp, rows, s, nb


def fused_forward(x_nchw, w1, b1, gamma, beta, w2, b2):
    """conv2(bn1(conv1(x))) with BatchNorm batch statistics (training-mode fwd).

    x_nchw: (N, 3, H, W) f32; w1/w2: (3, 3) 1x1-conv weights (Cout, Cin).
    b1 is accepted for signature parity but cancels in the BN mean subtraction.
    """
    # TODO(synk): eval-mode BatchNorm (running stats) would need the running
    # mean/var as extra inputs; this implements the training-mode forward.
    del b1  # mathematically a no-op under batch-norm mean subtraction
    N, c_in, H, W = x_nchw.shape
    assert c_in == C
    HW = H * W
    M = N * HW  # true pixel count (zero padding never enters the statistics)

    HWp, ROWS, S, Nb = _plan_tiles(HW, N)

    x3 = x_nchw.reshape(N, C, HW).astype(jnp.float32)
    if HWp != HW:
        # Zero padding: contributes 0 to all sums; M above uses the true count.
        x3 = jnp.pad(x3, ((0, 0), (0, 0), (0, HWp - HW)))
    x4 = x3.reshape(N, C, ROWS, _LANE)

    n_grid = N // Nb
    t_grid = ROWS // S
    grid = (n_grid, t_grid)

    x_spec = pl.BlockSpec((Nb, C, S, _LANE), lambda n, t: (n, 0, t, 0))

    # ---- Pass 1: raw-x moment partials, fully parallel grid, VALU-only reduce ----
    parts = pl.pallas_call(
        _stats_kernel,
        out_shape=jax.ShapeDtypeStruct((n_grid, t_grid, _NSTAT, _SUB, _LANE),
                                       jnp.float32),
        grid=grid,
        in_specs=[x_spec],
        out_specs=pl.BlockSpec((None, None, _NSTAT, _SUB, _LANE),
                               lambda n, t: (n, t, 0, 0, 0)),
        compiler_params=pltpu.CompilerParams(
            dimension_semantics=("parallel", "parallel"),
            vmem_limit_bytes=32 * 1024 * 1024),
        cost_estimate=pl.CostEstimate(
            flops=15 * M, transcendentals=0, bytes_accessed=4 * C * M),
    )(x4)

    # ---- Tiny fold (plain JAX): raw moments -> BN stats -> one 3x3 affine ----
    tot = jnp.sum(parts, axis=(0, 1, 3, 4))                        # (9,)
    mean_x = tot[:C] / M                                           # (3,)
    exx = jnp.zeros((C, C), jnp.float32)
    for k, (i, j) in enumerate(_PAIRS):
        exx = exx.at[i, j].set(tot[C + k])
        exx = exx.at[j, i].set(tot[C + k])
    cov = exx / M - jnp.outer(mean_x, mean_x)                      # Cov(x) (3,3)

    w1f = w1.astype(jnp.float32)
    w2f = w2.astype(jnp.float32)
    var_h = jnp.maximum(jnp.einsum('ci,ij,cj->c', w1f, cov, w1f), 0.0)   # Var(W1 x)
    g = gamma.astype(jnp.float32) * lax.rsqrt(var_h + BN_EPS)            # (3,)
    mean_h = w1f @ mean_x                                                # mean(W1 x)
    w_eff = w2f @ (g[:, None] * w1f)                                     # (3, 3)
    b_eff = b2.astype(jnp.float32) + w2f @ (beta.astype(jnp.float32) - g * mean_h)
    wb = jnp.concatenate([w_eff, b_eff[:, None]], axis=1)                # (3, 4)

    # ---- Pass 2: y = W_eff x + b_eff, dense tiles, megacore parallel ----
    wb_spec = pl.BlockSpec((C, C + 1), lambda n, t: (0, 0),
                           memory_space=pltpu.MemorySpace.SMEM)
    out4 = pl.pallas_call(
        _apply_kernel,
        out_shape=jax.ShapeDtypeStruct((N, C, ROWS, _LANE), jnp.float32),
        grid=grid,
        in_specs=[wb_spec, x_spec],
        out_specs=x_spec,
        compiler_params=pltpu.CompilerParams(
            dimension_semantics=("parallel", "parallel"),
            vmem_limit_bytes=32 * 1024 * 1024),
        cost_estimate=pl.CostEstimate(
            flops=18 * M, transcendentals=0, bytes_accessed=8 * C * M),
    )(wb, x4)

    out3 = out4.reshape(N, C, HWp)
    if HWp != HW:
        out3 = out3[:, :, :HW]
    return out3.reshape(N, C, H, W)


def reference_forward(x_nchw, w1, b1, gamma, beta, w2, b2):
    """Plain-JAX unfused reference (uses b1 explicitly) for validation."""
    n, c, h, w = x_nchw.shape
    x = jnp.transpose(x_nchw, (0, 2, 3, 1)).reshape(-1, c)
    hh = x @ w1.T + b1
    mean = jnp.mean(hh, axis=0, keepdims=True)
    var = jnp.mean((hh - mean) ** 2, axis=0, keepdims=True)
    hn = (hh - mean) / jnp.sqrt(var + BN_EPS) * gamma + beta
    y = hn @ w2.T + b2
    return jnp.transpose(y.reshape(n, h, w, c), (0, 3, 1, 2))


if __name__ == "__main__":
    key = jax.random.PRNGKey(0)
    k_x, k_w1, k_b1, k_w2, k_b2, k_g, k_be = jax.random.split(key, 7)

    N, H, W = 2, 16, 16
    x = jax.random.normal(k_x, (N, C, H, W), dtype=jnp.float32)

    # Shapes match nn.Conv2d(3,3,1) and nn.BatchNorm2d(3).
    bound = 1.0 / (C ** 0.5)
    w1 = jax.random.uniform(k_w1, (C, C), jnp.float32, -bound, bound)   # (Cout, Cin)
    b1 = jax.random.uniform(k_b1, (C,), jnp.float32, -bound, bound)
    w2 = jax.random.uniform(k_w2, (C, C), jnp.float32, -bound, bound)
    b2 = jax.random.uniform(k_b2, (C,), jnp.float32, -bound, bound)
    gamma = jax.random.uniform(k_g, (C,), jnp.float32, 0.5, 1.5)        # BN weight
    beta = jax.random.uniform(k_be, (C,), jnp.float32, -0.5, 0.5)       # BN bias

    out = jax.jit(fused_forward)(x, w1, b1, gamma, beta, w2, b2)
    out = jax.block_until_ready(out)

    ref = reference_forward(x, w1, b1, gamma, beta, w2, b2)
    assert out.shape == (N, C, H, W), out.shape
    max_err = float(jnp.max(jnp.abs(out - ref)))
    assert max_err < 1e-3, max_err

    print("KERNEL_OK")
</pallas_src>

<mosaic_0001>
module attributes {stable_mosaic.version = 11 : i64} {
  func.func @_stats_kernel(%arg0: i32, %arg1: i32, %arg2: memref<2x3x2x128xf32, #tpu.memory_space<vmem>>, %arg3: memref<1x1x9x8x128xf32, #tpu.memory_space<vmem>>) attributes {dimension_semantics = [#tpu.dimension_semantics<parallel>, #tpu.dimension_semantics<parallel>], iteration_bounds = array<i64: 1, 1>, scalar_prefetch = 0 : i64, scratch_operands = 0 : i64, tpu.core_type = #tpu.core_type<tc>, window_params = [{transform_indices = @transform_0, window_bounds = array<i64: 2, 3, 2, 128>}, {transform_indices = @transform_1, window_bounds = array<i64: 1, 1, 9, 8, 128>}]} {
    %c0 = arith.constant 0 : index
    %c0_0 = arith.constant 0 : index
    %c0_1 = arith.constant 0 : index
    %c0_2 = arith.constant 0 : index
    %0 = vector.load %arg2[%c0, %c0_0, %c0_1, %c0_2] : memref<2x3x2x128xf32, #tpu.memory_space<vmem>>, vector<2x1x2x128xf32>
    %c0_3 = arith.constant 0 : index
    %c1 = arith.constant 1 : index
    %c0_4 = arith.constant 0 : index
    %c0_5 = arith.constant 0 : index
    %1 = vector.load %arg2[%c0_3, %c1, %c0_4, %c0_5] : memref<2x3x2x128xf32, #tpu.memory_space<vmem>>, vector<2x1x2x128xf32>
    %c0_6 = arith.constant 0 : index
    %c2 = arith.constant 2 : index
    %c0_7 = arith.constant 0 : index
    %c0_8 = arith.constant 0 : index
    %2 = vector.load %arg2[%c0_6, %c2, %c0_7, %c0_8] : memref<2x3x2x128xf32, #tpu.memory_space<vmem>>, vector<2x1x2x128xf32>
    %3 = vector.shape_cast %0 : vector<2x1x2x128xf32> to vector<4x128xf32>
    %cst = arith.constant dense<0.000000e+00> : vector<128xf32>
    %4 = vector.multi_reduction <add>, %3, %cst [0] : vector<4x128xf32> to vector<128xf32>
    %5 = vector.shape_cast %4 : vector<128xf32> to vector<1x128xf32>
    %cst_9 = arith.constant 0.000000e+00 : f32
    %6 = vector.broadcast %cst_9 : f32 to vector<7x128xf32>
    %7 = tpu.concatenate %5, %6 in 0 : vector<1x128xf32>, vector<7x128xf32> -> vector<8x128xf32>
    %8 = vector.shape_cast %1 : vector<2x1x2x128xf32> to vector<4x128xf32>
    %cst_10 = arith.constant dense<0.000000e+00> : vector<128xf32>
    %9 = vector.multi_reduction <add>, %8, %cst_10 [0] : vector<4x128xf32> to vector<128xf32>
    %10 = vector.shape_cast %9 : vector<128xf32> to vector<1x128xf32>
    %cst_11 = arith.constant 0.000000e+00 : f32
    %11 = vector.broadcast %cst_11 : f32 to vector<7x128xf32>
    %12 = tpu.concatenate %10, %11 in 0 : vector<1x128xf32>, vector<7x128xf32> -> vector<8x128xf32>
    %13 = vector.shape_cast %2 : vector<2x1x2x128xf32> to vector<4x128xf32>
    %cst_12 = arith.constant dense<0.000000e+00> : vector<128xf32>
    %14 = vector.multi_reduction <add>, %13, %cst_12 [0] : vector<4x128xf32> to vector<128xf32>
    %15 = vector.shape_cast %14 : vector<128xf32> to vector<1x128xf32>
    %cst_13 = arith.constant 0.000000e+00 : f32
    %16 = vector.broadcast %cst_13 : f32 to vector<7x128xf32>
    %17 = tpu.concatenate %15, %16 in 0 : vector<1x128xf32>, vector<7x128xf32> -> vector<8x128xf32>
    %18 = arith.mulf %0, %0 : vector<2x1x2x128xf32>
    %19 = vector.shape_cast %18 : vector<2x1x2x128xf32> to vector<4x128xf32>
    %cst_14 = arith.constant dense<0.000000e+00> : vector<128xf32>
    %20 = vector.multi_reduction <add>, %19, %cst_14 [0] : vector<4x128xf32> to vector<128xf32>
    %21 = vector.shape_cast %20 : vector<128xf32> to vector<1x128xf32>
    %cst_15 = arith.constant 0.000000e+00 : f32
    %22 = vector.broadcast %cst_15 : f32 to vector<7x128xf32>
    %23 = tpu.concatenate %21, %22 in 0 : vector<1x128xf32>, vector<7x128xf32> -> vector<8x128xf32>
    %24 = arith.mulf %0, %1 : vector<2x1x2x128xf32>
    %25 = vector.shape_cast %24 : vector<2x1x2x128xf32> to vector<4x128xf32>
    %cst_16 = arith.constant dense<0.000000e+00> : vector<128xf32>
    %26 = vector.multi_reduction <add>, %25, %cst_16 [0] : vector<4x128xf32> to vector<128xf32>
    %27 = vector.shape_cast %26 : vector<128xf32> to vector<1x128xf32>
    %cst_17 = arith.constant 0.000000e+00 : f32
    %28 = vector.broadcast %cst_17 : f32 to vector<7x128xf32>
    %29 = tpu.concatenate %27, %28 in 0 : vector<1x128xf32>, vector<7x128xf32> -> vector<8x128xf32>
    %30 = arith.mulf %0, %2 : vector<2x1x2x128xf32>
    %31 = vector.shape_cast %30 : vector<2x1x2x128xf32> to vector<4x128xf32>
    %cst_18 = arith.constant dense<0.000000e+00> : vector<128xf32>
    %32 = vector.multi_reduction <add>, %31, %cst_18 [0] : vector<4x128xf32> to vector<128xf32>
    %33 = vector.shape_cast %32 : vector<128xf32> to vector<1x128xf32>
    %cst_19 = arith.constant 0.000000e+00 : f32
    %34 = vector.broadcast %cst_19 : f32 to vector<7x128xf32>
    %35 = tpu.concatenate %33, %34 in 0 : vector<1x128xf32>, vector<7x128xf32> -> vector<8x128xf32>
    %36 = arith.mulf %1, %1 : vector<2x1x2x128xf32>
    %37 = vector.shape_cast %36 : vector<2x1x2x128xf32> to vector<4x128xf32>
    %cst_20 = arith.constant dense<0.000000e+00> : vector<128xf32>
    %38 = vector.multi_reduction <add>, %37, %cst_20 [0] : vector<4x128xf32> to vector<128xf32>
    %39 = vector.shape_cast %38 : vector<128xf32> to vector<1x128xf32>
    %cst_21 = arith.constant 0.000000e+00 : f32
    %40 = vector.broadcast %cst_21 : f32 to vector<7x128xf32>
    %41 = tpu.concatenate %39, %40 in 0 : vector<1x128xf32>, vector<7x128xf32> -> vector<8x128xf32>
    %42 = arith.mulf %1, %2 : vector<2x1x2x128xf32>
    %43 = vector.shape_cast %42 : vector<2x1x2x128xf32> to vector<4x128xf32>
    %cst_22 = arith.constant dense<0.000000e+00> : vector<128xf32>
    %44 = vector.multi_reduction <add>, %43, %cst_22 [0] : vector<4x128xf32> to vector<128xf32>
    %45 = vector.shape_cast %44 : vector<128xf32> to vector<1x128xf32>
    %cst_23 = arith.constant 0.000000e+00 : f32
    %46 = vector.broadcast %cst_23 : f32 to vector<7x128xf32>
    %47 = tpu.concatenate %45, %46 in 0 : vector<1x128xf32>, vector<7x128xf32> -> vector<8x128xf32>
    %48 = arith.mulf %2, %2 : vector<2x1x2x128xf32>
    %49 = vector.shape_cast %48 : vector<2x1x2x128xf32> to vector<4x128xf32>
    %cst_24 = arith.constant dense<0.000000e+00> : vector<128xf32>
    %50 = vector.multi_reduction <add>, %49, %cst_24 [0] : vector<4x128xf32> to vector<128xf32>
    %51 = vector.shape_cast %50 : vector<128xf32> to vector<1x128xf32>
    %cst_25 = arith.constant 0.000000e+00 : f32
    %52 = vector.broadcast %cst_25 : f32 to vector<7x128xf32>
    %53 = tpu.concatenate %51, %52 in 0 : vector<1x128xf32>, vector<7x128xf32> -> vector<8x128xf32>
    %54 = vector.shape_cast %7 : vector<8x128xf32> to vector<1x8x128xf32>
    %55 = vector.shape_cast %12 : vector<8x128xf32> to vector<1x8x128xf32>
    %56 = vector.shape_cast %17 : vector<8x128xf32> to vector<1x8x128xf32>
    %57 = vector.shape_cast %23 : vector<8x128xf32> to vector<1x8x128xf32>
    %58 = vector.shape_cast %29 : vector<8x128xf32> to vector<1x8x128xf32>
    %59 = vector.shape_cast %35 : vector<8x128xf32> to vector<1x8x128xf32>
    %60 = vector.shape_cast %41 : vector<8x128xf32> to vector<1x8x128xf32>
    %61 = vector.shape_cast %47 : vector<8x128xf32> to vector<1x8x128xf32>
    %62 = vector.shape_cast %53 : vector<8x128xf32> to vector<1x8x128xf32>
    %63 = tpu.concatenate %54, %55, %56, %57, %58, %59, %60, %61, %62 in 0 : vector<1x8x128xf32>, vector<1x8x128xf32>, vector<1x8x128xf32>, vector<1x8x128xf32>, vector<1x8x128xf32>, vector<1x8x128xf32>, vector<1x8x128xf32>, vector<1x8x128xf32>, vector<1x8x128xf32> -> vector<9x8x128xf32>
    %c0_26 = arith.constant 0 : index
    %c0_27 = arith.constant 0 : index
    %c0_28 = arith.constant 0 : index
    %c0_29 = arith.constant 0 : index
    %c0_30 = arith.constant 0 : index
    %64 = vector.load %arg3[%c0_26, %c0_27, %c0_28, %c0_29, %c0_30] : memref<1x1x9x8x128xf32, #tpu.memory_space<vmem>>, vector<1x1x9x8x128xf32>
    %65 = vector.shape_cast %64 : vector<1x1x9x8x128xf32> to vector<9x8x128xf32>
    %66 = vector.shape_cast %63 : vector<9x8x128xf32> to vector<1x1x9x8x128xf32>
    tpu.vector_store %arg3[%c0_26, %c0_27, %c0_28, %c0_29, %c0_30], %66 {strides = array<i32>} : memref<1x1x9x8x128xf32, #tpu.memory_space<vmem>>, vector<1x1x9x8x128xf32>,
    return
  }
  func.func @transform_0(%arg0: i32, %arg1: i32) -> (i32, i32, i32, i32) {
    %c0_i32 = arith.constant 0 : i32
    %c0_i32_0 = arith.constant 0 : i32
    %c0_i32_1 = arith.constant 0 : i32
    return %arg0, %c0_i32, %arg1, %c0_i32_0 : i32, i32, i32, i32
  }
  func.func @transform_1(%arg0: i32, %arg1: i32) -> (i32, i32, i32, i32, i32) {
    %c0_i32 = arith.constant 0 : i32
    %c0_i32_0 = arith.constant 0 : i32
    %c0_i32_1 = arith.constant 0 : i32
    %c0_i32_2 = arith.constant 0 : i32
    return %arg0, %arg1, %c0_i32, %c0_i32_0, %c0_i32_1 : i32, i32, i32, i32, i32
  }
}

module attributes {stable_mosaic.version = 11 : i64} {
  func.func @_apply_kernel(%arg0: i32, %arg1: i32, %arg2: memref<3x4xf32, #tpu.memory_space<smem>>, %arg3: memref<2x3x2x128xf32, #tpu.memory_space<vmem>>, %arg4: memref<2x3x2x128xf32, #tpu.memory_space<vmem>>) attributes {dimension_semantics = [#tpu.dimension_semantics<parallel>, #tpu.dimension_semantics<parallel>], iteration_bounds = array<i64: 1, 1>, scalar_prefetch = 0 : i64, scratch_operands = 0 : i64, tpu.core_type = #tpu.core_type<tc>, window_params = [{transform_indices = @transform_0, window_bounds = array<i64: 3, 4>}, {transform_indices = @transform_1, window_bounds = array<i64: 2, 3, 2, 128>}, {transform_indices = @transform_2, window_bounds = array<i64: 2, 3, 2, 128>}]} {
    %c0 = arith.constant 0 : index
    %c0_0 = arith.constant 0 : index
    %c0_1 = arith.constant 0 : index
    %c0_2 = arith.constant 0 : index
    %0 = vector.load %arg3[%c0, %c0_0, %c0_1, %c0_2] : memref<2x3x2x128xf32, #tpu.memory_space<vmem>>, vector<2x1x2x128xf32>
    %c0_3 = arith.constant 0 : index
    %c1 = arith.constant 1 : index
    %c0_4 = arith.constant 0 : index
    %c0_5 = arith.constant 0 : index
    %1 = vector.load %arg3[%c0_3, %c1, %c0_4, %c0_5] : memref<2x3x2x128xf32, #tpu.memory_space<vmem>>, vector<2x1x2x128xf32>
    %c0_6 = arith.constant 0 : index
    %c2 = arith.constant 2 : index
    %c0_7 = arith.constant 0 : index
    %c0_8 = arith.constant 0 : index
    %2 = vector.load %arg3[%c0_6, %c2, %c0_7, %c0_8] : memref<2x3x2x128xf32, #tpu.memory_space<vmem>>, vector<2x1x2x128xf32>
    %c0_9 = arith.constant 0 : index
    %c0_10 = arith.constant 0 : index
    %3 = memref.load %arg2[%c0_9, %c0_10] : memref<3x4xf32, #tpu.memory_space<smem>>
    %4 = vector.broadcast %3 : f32 to vector<2x1x2x128xf32>
    %5 = arith.mulf %4, %0 : vector<2x1x2x128xf32>
    %c0_11 = arith.constant 0 : index
    %c1_12 = arith.constant 1 : index
    %6 = memref.load %arg2[%c0_11, %c1_12] : memref<3x4xf32, #tpu.memory_space<smem>>
    %7 = vector.broadcast %6 : f32 to vector<2x1x2x128xf32>
    %8 = arith.mulf %7, %1 : vector<2x1x2x128xf32>
    %9 = arith.addf %5, %8 : vector<2x1x2x128xf32>
    %c0_13 = arith.constant 0 : index
    %c2_14 = arith.constant 2 : index
    %10 = memref.load %arg2[%c0_13, %c2_14] : memref<3x4xf32, #tpu.memory_space<smem>>
    %11 = vector.broadcast %10 : f32 to vector<2x1x2x128xf32>
    %12 = arith.mulf %11, %2 : vector<2x1x2x128xf32>
    %13 = arith.addf %9, %12 : vector<2x1x2x128xf32>
    %c0_15 = arith.constant 0 : index
    %c3 = arith.constant 3 : index
    %14 = memref.load %arg2[%c0_15, %c3] : memref<3x4xf32, #tpu.memory_space<smem>>
    %15 = vector.broadcast %14 : f32 to vector<2x1x2x128xf32>
    %16 = arith.addf %13, %15 : vector<2x1x2x128xf32>
    %c0_16 = arith.constant 0 : index
    %c0_17 = arith.constant 0 : index
    %c0_18 = arith.constant 0 : index
    %c0_19 = arith.constant 0 : index
    %17 = vector.load %arg4[%c0_16, %c0_17, %c0_18, %c0_19] : memref<2x3x2x128xf32, #tpu.memory_space<vmem>>, vector<2x1x2x128xf32>
    tpu.vector_store %arg4[%c0_16, %c0_17, %c0_18, %c0_19], %16 {strides = array<i32>} : memref<2x3x2x128xf32, #tpu.memory_space<vmem>>, vector<2x1x2x128xf32>,
    %c1_20 = arith.constant 1 : index
    %c0_21 = arith.constant 0 : index
    %18 = memref.load %arg2[%c1_20, %c0_21] : memref<3x4xf32, #tpu.memory_space<smem>>
    %19 = vector.broadcast %18 : f32 to vector<2x1x2x128xf32>
    %20 = arith.mulf %19, %0 : vector<2x1x2x128xf32>
    %c1_22 = arith.constant 1 : index
    %c1_23 = arith.constant 1 : index
    %21 = memref.load %arg2[%c1_22, %c1_23] : memref<3x4xf32, #tpu.memory_space<smem>>
    %22 = vector.broadcast %21 : f32 to vector<2x1x2x128xf32>
    %23 = arith.mulf %22, %1 : vector<2x1x2x128xf32>
    %24 = arith.addf %20, %23 : vector<2x1x2x128xf32>
    %c1_24 = arith.constant 1 : index
    %c2_25 = arith.constant 2 : index
    %25 = memref.load %arg2[%c1_24, %c2_25] : memref<3x4xf32, #tpu.memory_space<smem>>
    %26 = vector.broadcast %25 : f32 to vector<2x1x2x128xf32>
    %27 = arith.mulf %26, %2 : vector<2x1x2x128xf32>
    %28 = arith.addf %24, %27 : vector<2x1x2x128xf32>
    %c1_26 = arith.constant 1 : index
    %c3_27 = arith.constant 3 : index
    %29 = memref.load %arg2[%c1_26, %c3_27] : memref<3x4xf32, #tpu.memory_space<smem>>
    %30 = vector.broadcast %29 : f32 to vector<2x1x2x128xf32>
    %31 = arith.addf %28, %30 : vector<2x1x2x128xf32>
    %c0_28 = arith.constant 0 : index
    %c1_29 = arith.constant 1 : index
    %c0_30 = arith.constant 0 : index
    %c0_31 = arith.constant 0 : index
    %32 = vector.load %arg4[%c0_28, %c1_29, %c0_30, %c0_31] : memref<2x3x2x128xf32, #tpu.memory_space<vmem>>, vector<2x1x2x128xf32>
    tpu.vector_store %arg4[%c0_28, %c1_29, %c0_30, %c0_31], %31 {strides = array<i32>} : memref<2x3x2x128xf32, #tpu.memory_space<vmem>>, vector<2x1x2x128xf32>,
    %c2_32 = arith.constant 2 : index
    %c0_33 = arith.constant 0 : index
    %33 = memref.load %arg2[%c2_32, %c0_33] : memref<3x4xf32, #tpu.memory_space<smem>>
    %34 = vector.broadcast %33 : f32 to vector<2x1x2x128xf32>
    %35 = arith.mulf %34, %0 : vector<2x1x2x128xf32>
    %c2_34 = arith.constant 2 : index
    %c1_35 = arith.constant 1 : index
    %36 = memref.load %arg2[%c2_34, %c1_35] : memref<3x4xf32, #tpu.memory_space<smem>>
    %37 = vector.broadcast %36 : f32 to vector<2x1x2x128xf32>
    %38 = arith.mulf %37, %1 : vector<2x1x2x128xf32>
    %39 = arith.addf %35, %38 : vector<2x1x2x128xf32>
    %c2_36 = arith.constant 2 : index
    %c2_37 = arith.constant 2 : index
    %40 = memref.load %arg2[%c2_36, %c2_37] : memref<3x4xf32, #tpu.memory_space<smem>>
    %41 = vector.broadcast %40 : f32 to vector<2x1x2x128xf32>
    %42 = arith.mulf %41, %2 : vector<2x1x2x128xf32>
    %43 = arith.addf %39, %42 : vector<2x1x2x128xf32>
    %c2_38 = arith.constant 2 : index
    %c3_39 = arith.constant 3 : index
    %44 = memref.load %arg2[%c2_38, %c3_39] : memref<3x4xf32, #tpu.memory_space<smem>>
    %45 = vector.broadcast %44 : f32 to vector<2x1x2x128xf32>
    %46 = arith.addf %43, %45 : vector<2x1x2x128xf32>
    %c0_40 = arith.constant 0 : index
    %c2_41 = arith.constant 2 : index
    %c0_42 = arith.constant 0 : index
    %c0_43 = arith.constant 0 : index
    %47 = vector.load %arg4[%c0_40, %c2_41, %c0_42, %c0_43] : memref<2x3x2x128xf32, #tpu.memory_space<vmem>>, vector<2x1x2x128xf32>
    tpu.vector_store %arg4[%c0_40, %c2_41, %c0_42, %c0_43], %46 {strides = array<i32>} : memref<2x3x2x128xf32, #tpu.memory_space<vmem>>, vector<2x1x2x128xf32>,
    return
  }
  func.func @transform_0(%arg0: i32, %arg1: i32) -> (i32, i32) {
    %c0_i32 = arith.constant 0 : i32
    %c0_i32_0 = arith.constant 0 : i32
    %c0_i32_1 = arith.constant 0 : i32
    return %c0_i32, %c0_i32_0 : i32, i32
  }
  func.func @transform_1(%arg0: i32, %arg1: i32) -> (i32, i32, i32, i32) {
    %c0_i32 = arith.constant 0 : i32
    %c0_i32_0 = arith.constant 0 : i32
    %c0_i32_1 = arith.constant 0 : i32
    return %arg0, %c0_i32, %arg1, %c0_i32_0 : i32, i32, i32, i32
  }
  func.func @transform_2(%arg0: i32, %arg1: i32) -> (i32, i32, i32, i32) {
    %c0_i32 = arith.constant 0 : i32
    %c0_i32_0 = arith.constant 0 : i32
    %c0_i32_1 = arith.constant 0 : i32
    return %arg0, %c0_i32, %arg1, %c0_i32_0 : i32, i32, i32, i32
  }
}

</mosaic_0001>

<bundles_post_ra>
// kernel: fused_forward.2
= control target key start
LH: loop header
LB: loop body
LE: loop exit
PB: predicated region body
PF: predicated region fallthrough
CT: control target
= control target key end

     0   :  { %v22_v0 = vlaneseq  ;;  %vm27_vm0 = vcmask 1043456   ;;  %v222_v3 = vmov 1983009808   ;;  %vm35_vm1 = vcmask 1040384   ;;  %s317_s0 = inlined_call_operand.vmem [shape: f32[2,3,2,128], index: 0, kind: input, shape index: {}]   ;;  %s318_s1 = inlined_call_operand.vmem [shape: f32[1,1,9,8,128], index: 1, kind: output, shape index: {}]  }
   0x1   :  { %v8_v1 = vld [vmem:[%s317_s0] sm:$0x3]  ;;  %v9_v2 = vld [vmem:[%s317_s0 + $0x6] sm:$0x3]  ;;  %v20_v4 = vunpack.c.l.s4 %v222_v3  ;;  %v214_v5 = vld [vmem:[%s317_s0 + $0x2] sm:$0x3] }
   0x2   :  { %v18_v6 = vcombine.low %v8_v1, %v9_v2  ;;  %v23_v7 = vshrl.u32 %v22_v0, 7  ;;  %v215_v8 = vld [vmem:[%s317_s0 + $0x8] sm:$0x3]  ;;  %v216_v9 = vld [vmem:[%s317_s0 + $0x4] sm:$0x3]  ;;  %v75_v10 = vmul.f32 %v8_v1, %v8_v1  ;;  %v76_v11 = vmul.f32 %v9_v2, %v9_v2 }
   0x3   :  { %v21_v12 = vunpack.c.0.s8 %v20_v4  ;;  %v39_v13 = vcombine.low %v214_v5, %v215_v8  ;;  %v251_v14 = vld [vmem:[%s317_s0 + $0xa] sm:$0x3]  ;;  %v96_v15 = vmul.f32 %v214_v5, %v8_v1  ;;  %v97_v16 = vmul.f32 %v215_v8, %v9_v2 }
   0x4   :  { %v58_v17 = vcombine.low %v216_v9, %v251_v14  ;;  %v79_v18 = vcombine.low %v75_v10, %v76_v11  ;;  %v117_v19 = vmul.f32 %v216_v9, %v8_v1  ;;  %v118_v20 = vmul.f32 %v251_v14, %v9_v2 }
   0x5   :  { %v255_v21 = vsub.s32 %v21_v12, %v23_v7  ;;  %v100_v22 = vcombine.low %v96_v15, %v97_v16  ;;  %v138_v23 = vmul.f32 %v214_v5, %v214_v5  ;;  %v139_v24 = vmul.f32 %v215_v8, %v215_v8 }
   0x6   :  { %v121_v25 = vcombine.low %v117_v19, %v118_v20  ;;  %v159_v26 = vmul.f32 %v216_v9, %v214_v5  ;;  %v160_v27 = vmul.f32 %v251_v14, %v215_v8  ;;  %v258_v28 = vmul.f32 %v216_v9, %v216_v9 }
   0x7   :  { %v25_v29 = vrot.slane %v18_v6, %v255_v21  ;;  %v46_v30 = vrot.slane %v39_v13, %v255_v21  ;;  %v65_v31 = vrot.slane %v58_v17, %v255_v21  ;;  %v86_v32 = vrot.slane %v79_v18, %v255_v21 }
   0x8   :  { %v107_v33 = vrot.slane %v100_v22, %v255_v21  ;;  %v128_v34 = vrot.slane %v121_v25, %v255_v21  ;;  %v142_v35 = vcombine.low %v138_v23, %v139_v24  ;;  %v163_v36 = vcombine.low %v159_v26, %v160_v27 }
   0x9   :  { %v28_v37 = vsel %vm27_vm0, %v25_v29, 0.0  ;;  %v48_v38 = vsel %vm27_vm0, %v46_v30, 0.0  ;;  %v67_v39 = vsel %vm27_vm0, %v65_v31, 0.0  ;;  %v88_v40 = vsel %vm27_vm0, %v86_v32, 0.0 }
   0xa   :  { %v29_v41 = vrot.slane %v28_v37, 4  ;;  %v49_v42 = vrot.slane %v48_v38, 4  ;;  %v68_v43 = vrot.slane %v67_v39, 4  ;;  %v89_v44 = vrot.slane %v88_v40, 4 }
   0xb   :  { %v109_v45 = vsel %vm27_vm0, %v107_v33, 0.0  ;;  %v130_v46 = vsel %vm27_vm0, %v128_v34, 0.0  ;;  %v149_v47 = vrot.slane %v142_v35, %v255_v21  ;;  %v170_v48 = vrot.slane %v163_v36, %v255_v21 }
   0xc   :  { %v30_v49 = vadd.f32 %v29_v41, %v28_v37  ;;  %v50_v50 = vadd.f32 %v49_v42, %v48_v38  ;;  %v69_v51 = vadd.f32 %v68_v43, %v67_v39  ;;  %v90_v52 = vadd.f32 %v89_v44, %v88_v40 }
   0xd   :  { %v110_v53 = vrot.slane %v109_v45, 4  ;;  %v131_v54 = vrot.slane %v130_v46, 4  ;;  %v151_v55 = vsel %vm27_vm0, %v149_v47, 0.0  ;;  %v172_v56 = vsel %vm27_vm0, %v170_v48, 0.0 }
   0xe   :  { %v31_v57 = vrot.slane %v30_v49, 2  ;;  %v51_v58 = vrot.slane %v50_v50, 2  ;;  %v70_v59 = vrot.slane %v69_v51, 2  ;;  %v91_v60 = vrot.slane %v90_v52, 2 }
   0xf   :  { %v111_v61 = vadd.f32 %v110_v53, %v109_v45  ;;  %v132_v62 = vadd.f32 %v131_v54, %v130_v46  ;;  %v152_v63 = vrot.slane %v151_v55, 4  ;;  %v173_v0 = vrot.slane %v172_v56, 4 }
  0x10   :  { %v32_v1 = vadd.f32 %v31_v57, %v30_v49  ;;  %v52_v2 = vadd.f32 %v51_v58, %v50_v50  ;;  %v71_v3 = vadd.f32 %v70_v59, %v69_v51  ;;  %v92_v4 = vadd.f32 %v91_v60, %v90_v52 }
  0x11   :  { %v112_v5 = vrot.slane %v111_v61, 2  ;;  %v133_v6 = vrot.slane %v132_v62, 2  ;;  %v153_v7 = vadd.f32 %v152_v63, %v151_v55  ;;  %v174_v8 = vadd.f32 %v173_v0, %v172_v56 }
  0x12   :  { %v33_v9 = vrot.slane %v32_v1, 1  ;;  %v53_v10 = vrot.slane %v52_v2, 1  ;;  %v72_v11 = vrot.slane %v71_v3, 1  ;;  %v93_v12 = vrot.slane %v92_v4, 1 }
  0x13   :  { %v113_v13 = vadd.f32 %v112_v5, %v111_v61  ;;  %v134_v15 = vadd.f32 %v133_v6, %v132_v62  ;;  %v154_v16 = vrot.slane %v153_v7, 2  ;;  %v175_v17 = vrot.slane %v174_v8, 2 }
  0x14   :  { %v34_v18 = vadd.f32 %v33_v9, %v32_v1  ;;  %v54_v19 = vadd.f32 %v53_v10, %v52_v2  ;;  %v73_v20 = vadd.f32 %v72_v11, %v71_v3  ;;  %v94_v22 = vadd.f32 %v93_v12, %v92_v4 }
  0x15   :  { %v114_v23 = vrot.slane %v113_v13, 1  ;;  %v135_v24 = vrot.slane %v134_v15, 1  ;;  %v155_v25 = vadd.f32 %v154_v16, %v153_v7  ;;  %v176_v26 = vadd.f32 %v175_v17, %v174_v8 }
  0x16   :  { %v36_v27 = vsel %vm35_vm1, %v34_v18, 0.0  ;;  %v55_v29 = vsel %vm35_vm1, %v54_v19, 0.0  ;;  %v74_v30 = vsel %vm35_vm1, %v73_v20, 0.0  ;;  %v95_v31 = vsel %vm35_vm1, %v94_v22, 0.0 }
  0x17   :  { %201 = vst [vmem:[%s318_s1] sm:$0xff] %v36_v27  ;;  %202 = vst [vmem:[%s318_s1 + $0x8] sm:$0xff] %v55_v29  ;;  %v115_v32 = vadd.f32 %v114_v23, %v113_v13  ;;  %v136_v33 = vadd.f32 %v135_v24, %v134_v15  ;;  %v156_v34 = vrot.slane %v155_v25, 1  ;;  %v177_v35 = vrot.slane %v176_v26, 1 }
  0x18   :  { %203 = vst [vmem:[%s318_s1 + $0x10] sm:$0xff] %v74_v30  ;;  %204 = vst [vmem:[%s318_s1 + $0x18] sm:$0xff] %v95_v31  ;;  %v181_v36 = vmul.f32 %v251_v14, %v251_v14 }
  0x19   :  { %v116_v37 = vsel %vm35_vm1, %v115_v32, 0.0  ;;  %v137_v38 = vsel %vm35_vm1, %v136_v33, 0.0  ;;  %v157_v39 = vadd.f32 %v156_v34, %v155_v25  ;;  %v178_v40 = vadd.f32 %v177_v35, %v176_v26 }
  0x1a   :  { %205 = vst [vmem:[%s318_s1 + $0x20] sm:$0xff] %v116_v37  ;;  %206 = vst [vmem:[%s318_s1 + $0x28] sm:$0xff] %v137_v38  ;;  %v184_v41 = vcombine.low %v258_v28, %v181_v36 }
  0x1b   :  { %v158_v42 = vsel %vm35_vm1, %v157_v39, 0.0  ;;  %v179_v14 = vsel %vm35_vm1, %v178_v40, 0.0 }
  0x1c   :  { %207 = vst [vmem:[%s318_s1 + $0x30] sm:$0xff] %v158_v42  ;;  %208 = vst [vmem:[%s318_s1 + $0x38] sm:$0xff] %v179_v14  ;;  %v191_v43 = vrot.slane %v184_v41, %v255_v21 }
  0x1e   :  { %v193_v44 = vsel %vm27_vm0, %v191_v43, 0.0 }
  0x1f   :  { %v194_v45 = vrot.slane %v193_v44, 4 }
  0x21   :  { %v195_v46 = vadd.f32 %v194_v45, %v193_v44 }
  0x23   :  { %v196_v47 = vrot.slane %v195_v46, 2 }
  0x25   :  { %v197_v28 = vadd.f32 %v196_v47, %v195_v46 }
  0x27   :  { %v198_v48 = vrot.slane %v197_v28, 1 }
  0x29   :  { %v199_v49 = vadd.f32 %v198_v48, %v197_v28 }
  0x2b   :  { %v200_v50 = vsel %vm35_vm1, %v199_v49, 0.0 }
  0x2c   :  { %209 = vst [vmem:[%s318_s1 + $0x40] sm:$0xff] %v200_v50 }

// kernel: fused_forward.3
= control target key start
LH: loop header
LB: loop body
LE: loop exit
PB: predicated region body
PF: predicated region fallthrough
CT: control target
= control target key end

     0   :  { %7 = vsyncpa [#allocation3], 0  ;;  %s221_s0 = inlined_call_operand.vmem [shape: f32[3,4], index: 0, kind: input, shape index: {}]   ;;  %s222_s1 = inlined_call_operand.vmem [shape: f32[2,3,2,128], index: 1, kind: input, shape index: {}]   ;;  %s223_s2 = inlined_call_operand.vmem [shape: f32[2,3,2,128], index: 2, kind: output, shape index: {}]  }
   0x1   :  { %s14_s11 = sshll.u32 %s221_s0, 4  ;;  %s15_s11 = int_to_ptr.vmem [resolvable:$true] %s14_s11 }
   0x2   :  { %s125_s12 = scalar_lea.vmem %s15_s11, 64  ;;  %p130_p1 = scmp.lt.s32.totalorder %s15_s11, %s15_s11 }
   0x3   :  { %p126_p0 = scmp.ne.s32.totalorder %s15_s11, %s125_s12  ;;  %p131_p2 = scmp.lt.s32.totalorder %s125_s12, %s125_s12 }
   0x5   :  { %p132_p3 = por %p131_p2, %p130_p1 }
   0x7   :  { %p133_p4 = pnand %p132_p3, %p126_p0 }
   0x9   :  { %136 = shalt.err (!%p133_p4)
}
   0xa   :  { %s139_s13 = smov [#allocation2]  }
   0xb   :  { %17 = dma.vmem_to_smem %s15_s11, 64, %s139_s13, [#allocation3]  }
   0xc   :  { %137 = dma.done.wait [#allocation3], 64  }
   0xd   :  { %138 = vsyncadd [#allocation3], 4294967232 }
   0xe   :  { %23 = sfence }
   0xf   :  { %s32_s14 = sld [smem:[#allocation2]]  ;;  %s109_s15 = sld [smem:[#allocation2 + $0x1]]  ;;  %v24_v0 = vld [vmem:[%s222_s1] sm:$0x3]  ;;  %v105_v1 = vld [vmem:[%s222_s1 + $0x2] sm:$0x3] }
  0x10   :  { %s110_s16 = sld [smem:[#allocation2 + $0x2]]  ;;  %s158_s17 = sld [smem:[#allocation2 + $0x3]]  ;;  %v107_v2 = vld [vmem:[%s222_s1 + $0x4] sm:$0x3]  ;;  %v25_v3 = vld [vmem:[%s222_s1 + $0x6] sm:$0x3] }
  0x11   :  { %s163_s19 = sld [smem:[#allocation2 + $0x80]]  ;;  %s165_s20 = sld [smem:[#allocation2 + $0x81]]  ;;  %v106_v4 = vld [vmem:[%s222_s1 + $0x8] sm:$0x3]  ;;  %v108_v5 = vld [vmem:[%s222_s1 + $0xa] sm:$0x3] }
  0x12   :  { %s170_s23 = sld [smem:[#allocation2 + $0x82]]  ;;  %s172_s24 = sld [smem:[#allocation2 + $0x83]] }
  0x13   :  { %s180_s29 = sld [smem:[#allocation2 + $0x100]]  ;;  %s188_s6 = sld [smem:[#allocation2 + $0x101]] }
  0x14   :  { %s190_s7 = sld [smem:[#allocation2 + $0x102]]  ;;  %s196_s1 = sld [smem:[#allocation2 + $0x103]] }
  0x15   :  { %v33_v6 = vstv %s32_s14  ;;  %v37_v7 = vstv %s109_s15 }
  0x16   :  { %v34_v8 = vmul.f32 %v33_v6, %v24_v0  ;;  %v38_v9 = vmul.f32 %v105_v1, %v37_v7  ;;  %v43_v10 = vstv %s110_s16  ;;  %v49_v11 = vstv %s158_s17 }
  0x17   :  { %v44_v12 = vmul.f32 %v107_v2, %v43_v10  ;;  %v35_v13 = vmul.f32 %v33_v6, %v25_v3  ;;  %v39_v14 = vmul.f32 %v106_v4, %v37_v7  ;;  %v45_v15 = vmul.f32 %v108_v5, %v43_v10 }
  0x18   :  { %v40_v16 = vadd.f32 %v38_v9, %v34_v8  ;;  %v55_v17 = vstv %s163_s19  ;;  %v59_v18 = vstv %s165_s20  ;;  %v65_v19 = vstv %s170_s23 }
  0x19   :  { %v41_v20 = vadd.f32 %v39_v14, %v35_v13  ;;  %v56_v21 = vmul.f32 %v55_v17, %v24_v0  ;;  %v60_v22 = vmul.f32 %v105_v1, %v59_v18  ;;  %v66_v23 = vmul.f32 %v107_v2, %v65_v19 }
  0x1a   :  { %v46_v24 = vadd.f32 %v44_v12, %v40_v16  ;;  %v71_v25 = vstv %s172_s24  ;;  %v57_v26 = vmul.f32 %v55_v17, %v25_v3  ;;  %v61_v27 = vmul.f32 %v106_v4, %v59_v18 }
  0x1b   :  { %v47_v28 = vadd.f32 %v45_v15, %v41_v20  ;;  %v62_v29 = vadd.f32 %v60_v22, %v56_v21  ;;  %v67_v30 = vmul.f32 %v108_v5, %v65_v19  ;;  %v78_v31 = vstv %s180_s29 }
  0x1c   :  { %v50_v32 = vadd.f32 %v49_v11, %v46_v24  ;;  %v63_v33 = vadd.f32 %v61_v27, %v57_v26  ;;  %v79_v34 = vmul.f32 %v78_v31, %v24_v0  ;;  %v82_v35 = vstv %s188_s6 }
  0x1d   :  { %v51_v36 = vadd.f32 %v49_v11, %v47_v28  ;;  %v68_v37 = vadd.f32 %v66_v23, %v62_v29  ;;  %v83_v38 = vmul.f32 %v105_v1, %v82_v35  ;;  %v88_v39 = vstv %s190_s7 }
  0x1e   :  { %52 = vst [vmem:[%s223_s2] sm:$0x3] %v50_v32  ;;  %v69_v40 = vadd.f32 %v67_v30, %v63_v33  ;;  %v89_v41 = vmul.f32 %v107_v2, %v88_v39  ;;  %v80_v42 = vmul.f32 %v78_v31, %v25_v3  ;;  %v84_v45 = vmul.f32 %v106_v4, %v82_v35 }
  0x1f   :  { %53 = vst [vmem:[%s223_s2 + $0x6] sm:$0x3] %v51_v36  ;;  %v72_v43 = vadd.f32 %v71_v25, %v68_v37  ;;  %v85_v44 = vadd.f32 %v83_v38, %v79_v34  ;;  %v90_v46 = vmul.f32 %v108_v5, %v88_v39  ;;  %v94_v48 = vstv %s196_s1 }
  0x20   :  { %v73_v47 = vadd.f32 %v71_v25, %v69_v40  ;;  %v86_v50 = vadd.f32 %v84_v45, %v80_v42 }
  0x21   :  { %116 = vst [vmem:[%s223_s2 + $0x2] sm:$0x3] %v72_v43  ;;  %v91_v49 = vadd.f32 %v89_v41, %v85_v44 }
  0x22   :  { %117 = vst [vmem:[%s223_s2 + $0x8] sm:$0x3] %v73_v47  ;;  %v92_v52 = vadd.f32 %v90_v46, %v86_v50 }
  0x23   :  { %v95_v51 = vadd.f32 %v94_v48, %v91_v49 }
  0x24   :  { %v96_v53 = vadd.f32 %v94_v48, %v92_v52 }
  0x25   :  { %122 = vst [vmem:[%s223_s2 + $0x4] sm:$0x3] %v95_v51 }
  0x26   :  { %123 = vst [vmem:[%s223_s2 + $0xa] sm:$0x3] %v96_v53 }
  0x27   :  { %104 = vsyncpa [#allocation3], 1 }

</bundles_post_ra>
